<compile_context>
chip_gen: v6e
topology: v6e:2x2x1
jax: 0.10.0
libtpu: 0.0.40
codegen_flags: <defaults>
</compile_context>

<pallas_src>
import functools

import jax
import jax.numpy as jnp
from jax.experimental import pallas as pl
from jax.experimental.pallas import tpu as pltpu


def _int_pow(x, e):
    """x ** e for a static non-negative integer e via repeated multiplies (VPU only)."""
    result = None
    base = x
    while e > 0:
        if e & 1:
            result = base if result is None else result * base
        e >>= 1
        if e:
            base = base * base
    if result is None:
        result = jnp.ones_like(x)
    return result


def _focal_loss_kernel(logits_ref, targets_ref, w_ref, out_ref, *,
                       gamma, ignore_index, n_classes):
    # logits_ref: (nb, C, tile_s, 128) -- each class slab is a dense (tile_s, 128)
    # slab, i.e. full sublane occupancy for all VPU/EUP work below.
    x = logits_ref[...].astype(jnp.float32)          # (nb, C, S, 128)
    t = targets_ref[...]                             # (nb, S, 128) int32

    # log-sum-exp over the class axis: the C-way max/add is plain elementwise VPU
    # work across dense slabs; exp/log go to the EUP.
    m = jnp.max(x, axis=1)                           # (nb, S, 128)
    s = jnp.sum(jnp.exp(x - m[:, None]), axis=1)     # (nb, S, 128)
    lse = jnp.log(s) + m

    # Pick the target-class logit and class weight via per-class compare+select.
    # Class weights are scalar SMEM reads (no (M, C) one-hot / broadcast).
    # TODO(synk): for very large C, switch this static unroll to
    # lax.fori_loop(..., unroll=True) to bound code size.
    picked_logit = jnp.zeros_like(m)
    picked_w = jnp.zeros_like(m)
    for c in range(n_classes):
        sel = t == c
        picked_logit = jnp.where(sel, x[:, c], picked_logit)
        picked_w = jnp.where(sel, w_ref[c], picked_w)

    # F.cross_entropy(..., weight, reduction='none', ignore_index):
    # ignored (and wrapper-padded) pixels contribute exactly 0.
    valid = t != ignore_index
    ce = jnp.where(valid, picked_w * (lse - picked_logit), 0.0)

    pt = jnp.exp(-ce)
    one_m_pt = 1.0 - pt

    g = float(gamma)
    if g == int(g) and int(g) >= 0:
        modulation = _int_pow(one_m_pt, int(g))      # gamma=4 -> two VPU multiplies
    else:
        modulation = one_m_pt ** g                   # non-integer gamma: EUP pow (log+exp)

    focal = modulation * ce                          # alpha applied once in the wrapper

    # One lane-padded partial sum per grid step; final tiny reduction in the wrapper.
    out_ref[...] = jnp.full(out_ref.shape, jnp.sum(focal), dtype=out_ref.dtype)


def _pick_tiling(n, n_classes, hw, itemsize, target_bytes=8 * 1024 * 1024):
    """Return (nb, tile_s): images per grid step and 128-pixel rows per step."""
    s_img = -(-hw // 128)                            # sublane rows of 128 pixels / image
    bytes_per_image = n_classes * s_img * 128 * itemsize
    if bytes_per_image >= target_bytes:
        # Large image: tile the row axis; rows per tile must be a multiple of 8
        # (or equal the full extent).
        tile_s = max(8, target_bytes // (n_classes * 128 * itemsize))
        tile_s = (tile_s // 8) * 8
        tile_s = min(tile_s, s_img)
        return 1, tile_s
    # Small image: whole image per step; batch as many images as fit the target
    # (largest divisor of N not exceeding the byte budget).
    nb_max = max(1, target_bytes // max(1, bytes_per_image))
    nb = 1
    for d in range(1, n + 1):
        if n % d == 0 and d <= nb_max:
            nb = d
    return nb, s_img


def focal_loss(inputs, targets, weight, *, alpha=0.99, gamma=4.0,
               size_average=True, ignore_index=-1):
    """inputs: (N, C, H, W) float, targets: (N, H, W) int, weight: (C,) float."""
    N, C, H, W = inputs.shape
    HW = H * W
    itemsize = jnp.dtype(inputs.dtype).itemsize

    nb, tile_s = _pick_tiling(N, C, HW, itemsize)
    hw_pad = -(-HW // (tile_s * 128)) * tile_s * 128
    s_pad = hw_pad // 128
    num_tiles = s_pad // tile_s
    n_blocks = N // nb

    # Free, contiguous reshapes only -- no full-tensor HBM transpose.  Pixels are
    # folded onto (sublane, lane) = (s_pad, 128); padding (if any) uses finite
    # logits and ignore_index targets so no ragged-tile masking is needed.
    logits = inputs.reshape(N, C, HW)
    tgt = targets.reshape(N, HW).astype(jnp.int32)
    pad = hw_pad - HW
    if pad:
        logits = jnp.pad(logits, ((0, 0), (0, 0), (0, pad)))
        tgt = jnp.pad(tgt, ((0, 0), (0, pad)), constant_values=int(ignore_index))
    logits = logits.reshape(N, C, s_pad, 128)
    tgt = tgt.reshape(N, s_pad, 128)
    wgt = weight.reshape(C).astype(jnp.float32)      # small, lives in SMEM

    kernel = functools.partial(
        _focal_loss_kernel,
        gamma=float(gamma), ignore_index=int(ignore_index), n_classes=C)

    partials = pl.pallas_call(
        kernel,
        out_shape=jax.ShapeDtypeStruct((n_blocks, num_tiles, 1, 128), jnp.float32),
        grid=(n_blocks, num_tiles),
        in_specs=[
            pl.BlockSpec((nb, C, tile_s, 128), lambda n, t: (n, 0, t, 0)),  # logits
            pl.BlockSpec((nb, tile_s, 128), lambda n, t: (n, t, 0)),        # targets
            pl.BlockSpec(memory_space=pltpu.MemorySpace.SMEM),              # weights
        ],
        out_specs=pl.BlockSpec((1, 1, 1, 128), lambda n, t: (n, t, 0, 0)),
        compiler_params=pltpu.CompilerParams(
            dimension_semantics=("parallel", "parallel"),
            vmem_limit_bytes=48 * 1024 * 1024),
    )(logits, tgt, wgt)

    total = alpha * jnp.sum(partials[:, :, 0, 0])
    if size_average:
        # Plain .mean() over all N*HW pixels (including ignore_index ones),
        # exactly as the PyTorch module does.
        total = total / (N * HW)
    return total


def _focal_loss_ref(inputs, targets, weight, *, alpha=0.99, gamma=4.0,
                    size_average=True, ignore_index=-1):
    # pure-JAX reference for sanity check
    N, C, H, W = inputs.shape
    logits = jnp.transpose(inputs, (0, 2, 3, 1)).reshape(-1, C).astype(jnp.float32)
    t = targets.reshape(-1).astype(jnp.int32)
    logp = jax.nn.log_softmax(logits, axis=-1)
    valid = t != ignore_index
    safe_t = jnp.where(valid, t, 0)
    picked = jnp.take_along_axis(logp, safe_t[:, None], axis=-1)[:, 0]
    ce = jnp.where(valid, -weight[safe_t] * picked, 0.0)
    pt = jnp.exp(-ce)
    focal = alpha * (1.0 - pt) ** gamma * ce
    return focal.mean() if size_average else focal.sum()


if __name__ == "__main__":
    key = jax.random.PRNGKey(0)
    k1, k2 = jax.random.split(key)

    N, C, H, W = 2, 4, 16, 16
    inputs = jax.random.normal(k1, (N, C, H, W), dtype=jnp.float32)
    targets = jax.random.randint(k2, (N, H, W), 0, C, dtype=jnp.int32)
    # sprinkle a few ignore_index entries to exercise masking
    targets = targets.at[0, 0, :4].set(-1)
    # deterministic class weights (module __init__ takes `weight` of shape (C,))
    weight = jnp.array([1.0, 0.5, 2.0, 1.5], dtype=jnp.float32)

    loss = focal_loss(inputs, targets, weight, alpha=0.99, gamma=4.0,
                      size_average=True, ignore_index=-1)
    jax.block_until_ready(loss)

    ref = _focal_loss_ref(inputs, targets, weight, alpha=0.99, gamma=4.0,
                          size_average=True, ignore_index=-1)
    assert jnp.allclose(loss, ref, rtol=1e-5, atol=1e-6), (loss, ref)

    print("KERNEL_OK")
</pallas_src>

<mosaic_0001>
module attributes {stable_mosaic.version = 11 : i64} {
  func.func @_focal_loss_kernel(%arg0: i32, %arg1: i32, %arg2: memref<2x4x2x128xf32, #tpu.memory_space<vmem>>, %arg3: memref<2x2x128xi32, #tpu.memory_space<vmem>>, %arg4: memref<4xf32, #tpu.memory_space<smem>>, %arg5: memref<1x1x1x128xf32, #tpu.memory_space<vmem>>) attributes {dimension_semantics = [#tpu.dimension_semantics<parallel>, #tpu.dimension_semantics<parallel>], iteration_bounds = array<i64: 1, 1>, scalar_prefetch = 0 : i64, scratch_operands = 0 : i64, tpu.core_type = #tpu.core_type<tc>, window_params = [{transform_indices = @transform_0, window_bounds = array<i64: 2, 4, 2, 128>}, {transform_indices = @transform_1, window_bounds = array<i64: 2, 2, 128>}, {transform_indices = @transform_2, window_bounds = array<i64: 4>}, {transform_indices = @transform_3, window_bounds = array<i64: 1, 1, 1, 128>}]} {
    %c0 = arith.constant 0 : index
    %c0_0 = arith.constant 0 : index
    %c0_1 = arith.constant 0 : index
    %c0_2 = arith.constant 0 : index
    %0 = vector.load %arg2[%c0, %c0_0, %c0_1, %c0_2] : memref<2x4x2x128xf32, #tpu.memory_space<vmem>>, vector<2x4x2x128xf32>
    %c0_3 = arith.constant 0 : index
    %c0_4 = arith.constant 0 : index
    %c0_5 = arith.constant 0 : index
    %1 = vector.load %arg3[%c0_3, %c0_4, %c0_5] : memref<2x2x128xi32, #tpu.memory_space<vmem>>, vector<2x2x128xi32>
    %cst = arith.constant dense<0xFF800000> : vector<2x2x128xf32>
    %2 = vector.multi_reduction <maximumf>, %0, %cst [1] : vector<2x4x2x128xf32> to vector<2x2x128xf32>
    %3 = vector.shape_cast %2 : vector<2x2x128xf32> to vector<2x1x2x128xf32>
    %4 = vector.broadcast %3 : vector<2x1x2x128xf32> to vector<2x4x2x128xf32>
    %5 = arith.subf %0, %4 : vector<2x4x2x128xf32>
    %6 = math.exp %5 : vector<2x4x2x128xf32>
    %cst_6 = arith.constant dense<0.000000e+00> : vector<2x2x128xf32>
    %7 = vector.multi_reduction <add>, %6, %cst_6 [1] : vector<2x4x2x128xf32> to vector<2x2x128xf32>
    %8 = math.log %7 : vector<2x2x128xf32>
    %9 = arith.addf %8, %2 : vector<2x2x128xf32>
    %cst_7 = arith.constant 0.000000e+00 : f32
    %10 = vector.broadcast %cst_7 : f32 to vector<2x2x128xf32>
    %cst_8 = arith.constant 0.000000e+00 : f32
    %11 = vector.broadcast %cst_8 : f32 to vector<2x2x128xf32>
    %c0_i32 = arith.constant 0 : i32
    %12 = vector.broadcast %c0_i32 : i32 to vector<2x2x128xi32>
    %13 = arith.cmpi eq, %1, %12 : vector<2x2x128xi32>
    %14 = vector.extract_strided_slice %0 {offsets = [0, 0, 0, 0], sizes = [2, 1, 2, 128], strides = [1, 1, 1, 1]} : vector<2x4x2x128xf32> to vector<2x1x2x128xf32>
    %15 = vector.shape_cast %14 : vector<2x1x2x128xf32> to vector<2x2x128xf32>
    %16 = arith.select %13, %15, %10 : vector<2x2x128xi1>, vector<2x2x128xf32>
    %c0_9 = arith.constant 0 : index
    %17 = memref.load %arg4[%c0_9] : memref<4xf32, #tpu.memory_space<smem>>
    %18 = vector.broadcast %17 : f32 to vector<2x2x128xf32>
    %19 = arith.select %13, %18, %11 : vector<2x2x128xi1>, vector<2x2x128xf32>
    %c1_i32 = arith.constant 1 : i32
    %20 = vector.broadcast %c1_i32 : i32 to vector<2x2x128xi32>
    %21 = arith.cmpi eq, %1, %20 : vector<2x2x128xi32>
    %22 = vector.extract_strided_slice %0 {offsets = [0, 1, 0, 0], sizes = [2, 1, 2, 128], strides = [1, 1, 1, 1]} : vector<2x4x2x128xf32> to vector<2x1x2x128xf32>
    %23 = vector.shape_cast %22 : vector<2x1x2x128xf32> to vector<2x2x128xf32>
    %24 = arith.select %21, %23, %16 : vector<2x2x128xi1>, vector<2x2x128xf32>
    %c1 = arith.constant 1 : index
    %25 = memref.load %arg4[%c1] : memref<4xf32, #tpu.memory_space<smem>>
    %26 = vector.broadcast %25 : f32 to vector<2x2x128xf32>
    %27 = arith.select %21, %26, %19 : vector<2x2x128xi1>, vector<2x2x128xf32>
    %c2_i32 = arith.constant 2 : i32
    %28 = vector.broadcast %c2_i32 : i32 to vector<2x2x128xi32>
    %29 = arith.cmpi eq, %1, %28 : vector<2x2x128xi32>
    %30 = vector.extract_strided_slice %0 {offsets = [0, 2, 0, 0], sizes = [2, 1, 2, 128], strides = [1, 1, 1, 1]} : vector<2x4x2x128xf32> to vector<2x1x2x128xf32>
    %31 = vector.shape_cast %30 : vector<2x1x2x128xf32> to vector<2x2x128xf32>
    %32 = arith.select %29, %31, %24 : vector<2x2x128xi1>, vector<2x2x128xf32>
    %c2 = arith.constant 2 : index
    %33 = memref.load %arg4[%c2] : memref<4xf32, #tpu.memory_space<smem>>
    %34 = vector.broadcast %33 : f32 to vector<2x2x128xf32>
    %35 = arith.select %29, %34, %27 : vector<2x2x128xi1>, vector<2x2x128xf32>
    %c3_i32 = arith.constant 3 : i32
    %36 = vector.broadcast %c3_i32 : i32 to vector<2x2x128xi32>
    %37 = arith.cmpi eq, %1, %36 : vector<2x2x128xi32>
    %38 = vector.extract_strided_slice %0 {offsets = [0, 3, 0, 0], sizes = [2, 1, 2, 128], strides = [1, 1, 1, 1]} : vector<2x4x2x128xf32> to vector<2x1x2x128xf32>
    %39 = vector.shape_cast %38 : vector<2x1x2x128xf32> to vector<2x2x128xf32>
    %40 = arith.select %37, %39, %32 : vector<2x2x128xi1>, vector<2x2x128xf32>
    %c3 = arith.constant 3 : index
    %41 = memref.load %arg4[%c3] : memref<4xf32, #tpu.memory_space<smem>>
    %42 = vector.broadcast %41 : f32 to vector<2x2x128xf32>
    %43 = arith.select %37, %42, %35 : vector<2x2x128xi1>, vector<2x2x128xf32>
    %c-1_i32 = arith.constant -1 : i32
    %44 = vector.broadcast %c-1_i32 : i32 to vector<2x2x128xi32>
    %45 = arith.cmpi ne, %1, %44 : vector<2x2x128xi32>
    %46 = arith.subf %9, %40 : vector<2x2x128xf32>
    %47 = arith.mulf %43, %46 : vector<2x2x128xf32>
    %cst_10 = arith.constant 0.000000e+00 : f32
    %48 = vector.broadcast %cst_10 : f32 to vector<2x2x128xf32>
    %49 = arith.select %45, %47, %48 : vector<2x2x128xi1>, vector<2x2x128xf32>
    %cst_11 = arith.constant 0.000000e+00 : f32
    %50 = vector.broadcast %cst_11 : f32 to vector<2x2x128xf32>
    %51 = arith.subf %50, %49 : vector<2x2x128xf32>
    %52 = math.exp %51 : vector<2x2x128xf32>
    %cst_12 = arith.constant 1.000000e+00 : f32
    %53 = vector.broadcast %cst_12 : f32 to vector<2x2x128xf32>
    %54 = arith.subf %53, %52 : vector<2x2x128xf32>
    %55 = arith.mulf %54, %54 : vector<2x2x128xf32>
    %56 = arith.mulf %55, %55 : vector<2x2x128xf32>
    %57 = arith.mulf %56, %49 : vector<2x2x128xf32>
    %58 = vector.shape_cast %57 : vector<2x2x128xf32> to vector<1x2x2x128xf32>
    %cst_13 = arith.constant dense<0.000000e+00> : vector<1xf32>
    %59 = vector.multi_reduction <add>, %58, %cst_13 [1, 2, 3] : vector<1x2x2x128xf32> to vector<1xf32>
    %60 = vector.shape_cast %59 : vector<1xf32> to vector<1x1x1x1xf32>
    %61 = vector.extract %60[0, 0, 0, 0] : f32 from vector<1x1x1x1xf32>
    %62 = vector.broadcast %61 : f32 to vector<1x1x1x128xf32>
    %c0_14 = arith.constant 0 : index
    %c0_15 = arith.constant 0 : index
    %c0_16 = arith.constant 0 : index
    %c0_17 = arith.constant 0 : index
    %63 = vector.load %arg5[%c0_14, %c0_15, %c0_16, %c0_17] : memref<1x1x1x128xf32, #tpu.memory_space<vmem>>, vector<1x1x1x128xf32>
    tpu.vector_store %arg5[%c0_14, %c0_15, %c0_16, %c0_17], %62 {strides = array<i32>} : memref<1x1x1x128xf32, #tpu.memory_space<vmem>>, vector<1x1x1x128xf32>,
    return
  }
  func.func @transform_0(%arg0: i32, %arg1: i32) -> (i32, i32, i32, i32) {
    %c0_i32 = arith.constant 0 : i32
    %c0_i32_0 = arith.constant 0 : i32
    %c0_i32_1 = arith.constant 0 : i32
    return %arg0, %c0_i32, %arg1, %c0_i32_0 : i32, i32, i32, i32
  }
  func.func @transform_1(%arg0: i32, %arg1: i32) -> (i32, i32, i32) {
    %c0_i32 = arith.constant 0 : i32
    %c0_i32_0 = arith.constant 0 : i32
    return %arg0, %arg1, %c0_i32 : i32, i32, i32
  }
  func.func @transform_2(%arg0: i32, %arg1: i32) -> i32 {
    %c0_i32 = arith.constant 0 : i32
    %c0_i32_0 = arith.constant 0 : i32
    return %c0_i32 : i32
  }
  func.func @transform_3(%arg0: i32, %arg1: i32) -> (i32, i32, i32, i32) {
    %c0_i32 = arith.constant 0 : i32
    %c0_i32_0 = arith.constant 0 : i32
    %c0_i32_1 = arith.constant 0 : i32
    return %arg0, %arg1, %c0_i32, %c0_i32_0 : i32, i32, i32, i32
  }
}

</mosaic_0001>

<bundles_post_ra>
// kernel: tpu_custom_call.1
= control target key start
LH: loop header
LB: loop body
LE: loop exit
PB: predicated region body
PF: predicated region fallthrough
CT: control target
= control target key end

     0   :  { %8 = vsyncpa [#allocation3], 0  ;;  %s441_s0 = inlined_call_operand.hbm [shape: f32[2,4,2,128], index: 0, kind: input, shape index: {}]   ;;  %s442_s1 = inlined_call_operand.hbm [shape: s32[2,2,128], index: 1, kind: input, shape index: {}]   ;;  %s443_s2 = inlined_call_operand.vmem [shape: f32[4], index: 2, kind: input, shape index: {}]   ;;  %s444_s3 = inlined_call_operand.hbm [shape: f32[1,1,1,128], index: 3, kind: output, shape index: {}]  }
   0x1   :  { %9 = vsyncpa [#allocation7], 0 }
   0x2   :  { %10 = vsyncpa [#allocation5], 0 }
   0x3   :  { %11 = vsyncpa [#allocation4], 0  ;;  %s325_s12 = smov [#allocation2]  }
   0x4   :  { %s17_s13 = sshll.u32 %s325_s12, 4  ;;  %s18_s13 = int_to_ptr.vmem [resolvable:$true] %s17_s13 }
   0x5   :  { %s253_s14 = scalar_lea.vmem %s18_s13, 256  ;;  %p258_p1 = scmp.lt.s32.totalorder %s18_s13, %s18_s13 }
   0x6   :  { %p254_p0 = scmp.ne.s32.totalorder %s18_s13, %s253_s14  ;;  %p259_p2 = scmp.lt.s32.totalorder %s253_s14, %s253_s14 }
   0x8   :  { %p260_p3 = por %p259_p2, %p258_p1 }
   0xa   :  { %p261_p4 = pnand %p260_p3, %p254_p0 }
   0xc   :  { %264 = shalt.err (!%p261_p4)
}
   0xd   :  { %s326_s15 = smov 32   ;;  %s327_s16 = smov 2  }
   0xe   :  { %23 = dma.hbm_to_vmem [thread:$0]  %s441_s0, 256, %s18_s13, [#allocation3], %s326_s15, %s326_s15, %s327_s16  }
   0xf   :  { %s328_s19 = smov [#allocation6]   ;;  %s42_s23 = sshll.u32 %s443_s2, 4  ;;  %s43_s23 = int_to_ptr.vmem [resolvable:$true] %s42_s23 }
  0x10   :  { %s29_s20 = sshll.u32 %s328_s19, 4  ;;  %s30_s20 = int_to_ptr.vmem [resolvable:$true] %s29_s20 }
  0x11   :  { %s273_s24 = scalar_lea.vmem %s30_s20, 64  ;;  %p278_p6 = scmp.lt.s32.totalorder %s30_s20, %s30_s20 }
  0x12   :  { %p274_p5 = scmp.ne.s32.totalorder %s30_s20, %s273_s24  ;;  %p279_p7 = scmp.lt.s32.totalorder %s273_s24, %s273_s24 }
  0x14   :  { %p280_p8 = por %p279_p7, %p278_p6 }
  0x16   :  { %p281_p9 = pnand %p280_p8, %p274_p5 }
  0x18   :  { %284 = shalt.err (!%p281_p9)
}
  0x19   :  { %35 = dma.hbm_to_vmem [thread:$0]  %s442_s1, 64, %s30_s20, [#allocation7], %s326_s15, %s326_s15, %s327_s16  }
  0x1a   :  { %s285_s0 = scalar_lea.vmem %s43_s23, 16  ;;  %p290_p11 = scmp.lt.s32.totalorder %s43_s23, %s43_s23 }
  0x1b   :  { %p286_p10 = scmp.ne.s32.totalorder %s43_s23, %s285_s0  ;;  %p291_p12 = scmp.lt.s32.totalorder %s285_s0, %s285_s0 }
  0x1d   :  { %p292_p13 = por %p291_p12, %p290_p11 }
  0x1f   :  { %p293_p0 = pnand %p292_p13, %p286_p10 }
  0x21   :  { %296 = shalt.err (!%p293_p0)
}
  0x22   :  { %s329_s2 = smov [#allocation8]  }
  0x23   :  { %45 = dma.vmem_to_smem %s43_s23, 16, %s329_s2, [#allocation5]  }
  0x24   :  { %317 = dma.done.wait [#allocation3], 256  }
  0x25   :  { %318 = vsyncadd [#allocation3], 4294967040 }
  0x26   :  { %319 = dma.done.wait [#allocation7], 64  }
  0x27   :  { %320 = vsyncadd [#allocation7], 4294967232 }
  0x28   :  { %321 = dma.done.wait [#allocation5], 16  }
  0x29   :  { %322 = vsyncadd [#allocation5], 4294967280 }
  0x2a   :  { %55 = sfence }
  0x2b   :  { %v360_v0 = vld [vmem:[#allocation2] sm:$0x3]  ;;  %v362_v1 = vld [vmem:[#allocation2 + $0x2] sm:$0x3]  ;;  %v364_v2 = vld [vmem:[#allocation2 + $0x4] sm:$0x3] }
  0x2c   :  { %v366_v3 = vld [vmem:[#allocation2 + $0x6] sm:$0x3]  ;;  %v368_v4 = vld [vmem:[#allocation2 + $0x8] sm:$0x3]  ;;  %v370_v5 = vld [vmem:[#allocation2 + $0xa] sm:$0x3] }
  0x2d   :  { %v372_v6 = vld [vmem:[#allocation2 + $0xc] sm:$0x3]  ;;  %v374_v7 = vld [vmem:[#allocation2 + $0xe] sm:$0x3]  ;;  %vm66_vm0 = vcmask 1041408   ;;  %s129_s1 = sld [smem:[#allocation8]] }
  0x2e   :  { %v67_v8 = vsel %vm66_vm0, %v360_v0, -inf  ;;  %v68_v9 = vsel %vm66_vm0, %v362_v1, -inf  ;;  %v69_v10 = vsel %vm66_vm0, %v364_v2, -inf  ;;  %v71_v11 = vsel %vm66_vm0, %v366_v3, -inf  ;;  %v64_v58 = vld [vmem:[#allocation6] sm:$0x3] }
  0x2f   :  { %v70_v12 = vmax.f32 %v67_v8, %v69_v10  ;;  %v72_v13 = vmax.f32 %v68_v9, %v71_v11  ;;  %v74_v14 = vsel %vm66_vm0, %v368_v4, -inf  ;;  %v75_v15 = vsel %vm66_vm0, %v370_v5, -inf  ;;  %s210_s27 = sld [smem:[#allocation8 + $0x1]]  ;;  %v65_v61 = vld [vmem:[#allocation6 + $0x2] sm:$0x3]  ;;  %s330_s30 = smov [#allocation9]  }
  0x30   :  { %v76_v16 = vsel %vm66_vm0, %v372_v6, -inf  ;;  %v78_v17 = vsel %vm66_vm0, %v374_v7, -inf  ;;  %vm125_vm1 = vcmp.eq.s32.totalorder %v64_v58, 0  ;;  %s420_s28 = sld [smem:[#allocation8 + $0x2]]  ;;  %vm133_vm2 = vcmp.eq.s32.totalorder %v64_v58, 1  ;;  %s199_s4 = sshll.u32 %s330_s30, 4  ;;  %s200_s4 = int_to_ptr.vmem [resolvable:$true] %s199_s4 }
  0x31   :  { %v392_v18 = vmax.f32 %v70_v12, %v72_v13  ;;  %v77_v19 = vmax.f32 %v74_v14, %v76_v16  ;;  %v79_v20 = vmax.f32 %v75_v15, %v78_v17  ;;  %v127_v63 = vsel %vm125_vm1, %v360_v0, 0.0  ;;  %s423_s29 = sld [smem:[#allocation8 + $0x3]]  ;;  %s297_s6 = scalar_lea.vmem %s200_s4, 16 }
  0x32   :  { %vm126_vm3 = vcmp.eq.s32.totalorder %v65_v61, 0  ;;  %v135_v10 = vsel %vm133_vm2, %v362_v1, %v127_v63  ;;  %vm141_vm4 = vcmp.eq.s32.totalorder %v64_v58, 2  ;;  %vm134_vm5 = vcmp.eq.s32.totalorder %v65_v61, 1  ;;  %p298_p1 = scmp.ne.s32.totalorder %s200_s4, %s297_s6  ;;  %s301_s7 = scalar_lea.vmem %s200_s4, 32 }
  0x33   :  { %v394_v21 = vmax.f32 %v77_v19, %v79_v20  ;;  %v81_v22 = vsub.f32 %v360_v0, %v392_v18  ;;  %v82_v23 = vsub.f32 %v362_v1, %v392_v18  ;;  %v83_v24 = vsub.f32 %v364_v2, %v392_v18  ;;  %p302_p2 = scmp.lt.s32.totalorder %s200_s4, %s200_s4  ;;  %p303_p3 = scmp.lt.s32.totalorder %s301_s7, %s297_s6 }
  0x34   :  { %v84_v25 = vsub.f32 %v366_v3, %v392_v18  ;;  %v130_v62 = vstv %s129_s1  ;;  %v128_v11 = vsel %vm126_vm3, %v368_v4, 0.0  ;;  %v143_v15 = vsel %vm141_vm4, %v364_v2, %v135_v10 }
  0x35   :  { %v85_v26 = vsub.f32 %v368_v4, %v394_v21  ;;  %v86_v27 = vsub.f32 %v370_v5, %v394_v21  ;;  %v87_v28 = vsub.f32 %v372_v6, %v394_v21  ;;  %v89_v29 = vmul.f32 1.442695, %v81_v22  ;;  %p304_p4 = por %p303_p3, %p302_p2 }
  0x36   :  { %v91_v30 = vmul.f32 1.442695, %v82_v23  ;;  %v93_v31 = vmul.f32 1.442695, %v83_v24  ;;  %v88_v32 = vsub.f32 %v374_v7, %v394_v21  ;;  %v95_v33 = vmul.f32 1.442695, %v84_v25 }
  0x37   :  { %221 = vpow2.f32 %v89_v29  ;;  %v97_v34 = vmul.f32 1.442695, %v85_v26  ;;  %v99_v35 = vmul.f32 1.442695, %v86_v27  ;;  %v101_v36 = vmul.f32 1.442695, %v87_v28  ;;  %p305_p5 = pnand %p304_p4, %p298_p1 }
  0x38   :  { %223 = vpow2.f32 %v91_v30  ;;  %v103_v37 = vmul.f32 1.442695, %v88_v32  ;;  %v131_v8 = vsel %vm125_vm1, %v130_v62, 0.0  ;;  %v138_v9 = vstv %s210_s27 }
  0x39   :  { %225 = vpow2.f32 %v93_v31  ;;  %v139_v12 = vsel %vm133_vm2, %v138_v9, %v131_v8  ;;  %v146_v13 = vstv %s420_s28  ;;  %v132_v14 = vsel %vm126_vm3, %v130_v62, 0.0 }
  0x3a   :  { %227 = vpow2.f32 %v95_v33  ;;  %vm149_vm6 = vcmp.eq.s32.totalorder %v64_v58, 3  ;;  %v136_v16 = vsel %vm134_vm5, %v370_v5, %v128_v11  ;;  %vm142_vm7 = vcmp.eq.s32.totalorder %v65_v61, 2 }
  0x3b   :  { %229 = vpow2.f32 %v97_v34  ;;  %v147_v19 = vsel %vm141_vm4, %v146_v13, %v139_v12  ;;  %v154_v20 = vstv %s423_s29  ;;  %v140_v22 = vsel %vm134_vm5, %v138_v9, %v132_v14 }
  0x3c   :  { %231 = vpow2.f32 %v99_v35  ;;  %v151_v1 = vsel %vm149_vm6, %v366_v3, %v143_v15  ;;  %v144_v4 = vsel %vm142_vm7, %v372_v6, %v136_v16  ;;  %vm150_vm8 = vcmp.eq.s32.totalorder %v65_v61, 3 }
  0x3d   :  { %233 = vpow2.f32 %v101_v36  ;;  %v155_v25 = vsel %vm149_vm6, %v154_v20, %v147_v19  ;;  %v148_v2 = vsel %vm142_vm7, %v146_v13, %v140_v22  ;;  %v152_v28 = vsel %vm150_vm8, %v374_v7, %v144_v4 }
  0x3e   :  { %235 = vpow2.f32 %v103_v37  ;;  %vm157_vm9 = vcmp.ne.s32.totalorder %v64_v58, 4294967295  ;;  %v156_v30 = vsel %vm150_vm8, %v154_v20, %v148_v2  ;;  %vm158_vm10 = vcmp.ne.s32.totalorder %v65_v61, 4294967295 }
  0x44   :  { %v222_v38 = vpop.eup %221 }
  0x45   :  { %v224_v39 = vpop.eup %223  ;;  %v105_v40 = vsel %vm66_vm0, %v222_v38, 0.0 }
  0x46   :  { %v226_v41 = vpop.eup %225  ;;  %v106_v42 = vsel %vm66_vm0, %v224_v39, 0.0 }
  0x47   :  { %v228_v43 = vpop.eup %227  ;;  %v107_v44 = vadd.f32 %v106_v42, %v105_v40  ;;  %v108_v45 = vsel %vm66_vm0, %v226_v41, 0.0 }
  0x48   :  { %v230_v46 = vpop.eup %229  ;;  %v110_v47 = vsel %vm66_vm0, %v228_v43, 0.0 }
  0x49   :  { %v232_v48 = vpop.eup %231  ;;  %v109_v49 = vadd.f32 %v108_v45, %v107_v44  ;;  %v112_v50 = vsel %vm66_vm0, %v230_v46, 0.0 }
  0x4a   :  { %v234_v51 = vpop.eup %233  ;;  %v113_v52 = vsel %vm66_vm0, %v232_v48, 0.0 }
  0x4b   :  { %v236_v53 = vpop.eup %235  ;;  %v111_v54 = vadd.f32 %v110_v47, %v109_v49  ;;  %v114_v55 = vadd.f32 %v113_v52, %v112_v50  ;;  %v115_v56 = vsel %vm66_vm0, %v234_v51, 0.0 }
  0x4c   :  { %v117_v57 = vsel %vm66_vm0, %v236_v53, 0.0 }
  0x4d   :  { %v116_v59 = vadd.f32 %v115_v56, %v114_v55  ;;  %237 = vlog2.f32 %v111_v54 }
  0x4f   :  { %v118_v60 = vadd.f32 %v117_v57, %v116_v59 }
  0x51   :  { %239 = vlog2.f32 %v118_v60 }
  0x5a   :  { %v238_v0 = vpop.eup %237 }
  0x5b   :  { %v120_v17 = vmul.f32 0.6931472, %v238_v0 }
  0x5d   :  { %v123_v23 = vadd.f32 %v120_v17, %v392_v18 }
  0x5e   :  { %v240_v24 = vpop.eup %239 }
  0x5f   :  { %v122_v26 = vmul.f32 0.6931472, %v240_v24  ;;  %v159_v27 = vsub.f32 %v123_v23, %v151_v1 }
  0x61   :  { %v124_v5 = vadd.f32 %v122_v26, %v394_v21  ;;  %v161_v29 = vmul.f32 %v159_v27, %v155_v25 }
  0x63   :  { %v160_v31 = vsub.f32 %v124_v5, %v152_v28  ;;  %v163_v32 = vsel %vm157_vm9, %v161_v29, 0.0 }
  0x64   :  { %v165_v3 = vsub.f32 0.0, %v163_v32 }
  0x65   :  { %v162_v18 = vmul.f32 %v160_v31, %v156_v30 }
  0x66   :  { %v167_v33 = vmul.f32 1.442695, %v165_v3 }
  0x67   :  { %v164_v6 = vsel %vm158_vm10, %v162_v18, 0.0 }
  0x68   :  { %v166_v34 = vsub.f32 0.0, %v164_v6  ;;  %241 = vpow2.f32 %v167_v33 }
  0x6a   :  { %v169_v35 = vmul.f32 1.442695, %v166_v34 }
  0x6c   :  { %243 = vpow2.f32 %v169_v35 }
  0x75   :  { %v242_v36 = vpop.eup %241 }
  0x76   :  { %v171_v37 = vsub.f32 1.0, %v242_v36 }
  0x78   :  { %v173_v38 = vmul.f32 %v171_v37, %v171_v37 }
  0x79   :  { %v244_v7 = vpop.eup %243 }
  0x7a   :  { %v172_v39 = vsub.f32 1.0, %v244_v7  ;;  %v175_v40 = vmul.f32 %v173_v38, %v173_v38 }
  0x7c   :  { %v174_v21 = vmul.f32 %v172_v39, %v172_v39  ;;  %v177_v41 = vmul.f32 %v175_v40, %v163_v32 }
  0x7e   :  { %v176_v42 = vmul.f32 %v174_v21, %v174_v21  ;;  %v179_v44 = vsel %vm66_vm0, %v177_v41, 0.0 }
  0x80   :  { %v178_v43 = vmul.f32 %v176_v42, %v164_v6 }
  0x82   :  { %v180_v45 = vsel %vm66_vm0, %v178_v43, 0.0 }
  0x83   :  { %v181_v46 = vadd.f32 %v180_v45, %v179_v44 }
  0x85   :  { %182 = vadd.xlane.f32.xlu0 %v181_v46 }
 0x10e   :  { %v183_v47 = vpop.xlane.xlu0 %182 }
 0x10f   :  { %v184_v48 = vrot.slane %v183_v47, 4 }
 0x111   :  { %v185_v49 = vadd.f32 %v184_v48, %v183_v47 }
 0x113   :  { %v186_v50 = vrot.slane %v185_v49, 2 }
 0x115   :  { %v187_v51 = vadd.f32 %v186_v50, %v185_v49 }
 0x117   :  { %v188_v52 = vrot.slane %v187_v51, 1 }
 0x119   :  { %v189_v53 = vadd.f32 %v188_v52, %v187_v51 }
 0x11b   :  { %213 = vpush %v189_v53 }
 0x14c   :  { %s214_s5 = spop %213 }
 0x14d   :  { %v191_v54 = vstv %s214_s5 }
 0x14e   :  { %192 = vst [vmem:[#allocation9] sm:$0x1] %v191_v54 }
 0x14f   :  { %308 = shalt.err (!%p305_p5)
}
 0x150   :  { %202 = dma.vmem_to_hbm [thread:$0]  %s200_s4, 16, %s444_s3, [#allocation4]  }
 0x151   :  { %323 = dma.done.wait [#allocation4], 16  }
 0x152   :  { %324 = vsyncadd [#allocation4], 4294967280 }
 0x153   :  { %206 = vsyncpa [#allocation3], 1 }
 0x154   :  { %207 = vsyncpa [#allocation7], 1 }
 0x155   :  { %208 = vsyncpa [#allocation4], 1 }
 0x156   :  { %209 = vsyncpa [#allocation5], 1 }

</bundles_post_ra>
